<compile_context>
chip_gen: v7x
topology: tpu7x:2x2x1
jax: 0.10.0
libtpu: 0.0.40
codegen_flags: <defaults>
</compile_context>

<pallas_src>
import jax
import jax.numpy as jnp
from jax.experimental import pallas as pl
from jax.experimental.pallas import tpu as pltpu

HIDDEN = 128
IN_DIM = 6 * 7          # 42
OUT_DIM = 7
LANE_PAD = 128          # lane alignment
ROW_ALIGN = 8           # sublane alignment
NUM_LAYERS = 4
NEG_SLOPE = 0.01        # F.leaky_relu default
MAX_TILE_ROWS = 256     # batch rows per grid step (use 128 on v5e)


def _round_up(n, m):
    return ((n + m - 1) // m) * m


def _pad2d(a, rows, cols):
    r, c = a.shape
    return jnp.pad(a, ((0, rows - r), (0, cols - c)))


# --------------------------------------------------------------------------
# Kernel: whole 4-layer MLP on one (TB, 128) batch tile, weights resident.
# --------------------------------------------------------------------------
def mlp_kernel(x_ref, w_ref, b_ref, o_ref):
    # x_ref: (TB, 128) bf16   w_ref: (4, 128, 128) bf16
    # b_ref: (4, 1, 128) f32  o_ref: (TB, 128) f32
    h = x_ref[...]                                    # bf16 activations
    out_f32 = None
    for k in range(NUM_LAYERS):                       # statically unrolled
        acc = jnp.dot(h, w_ref[k],                    # MXU bf16 x bf16 -> f32
                      preferred_element_type=jnp.float32) + b_ref[k]
        acc = jnp.where(acc > 0.0, acc, NEG_SLOPE * acc)   # leaky_relu (VPU, f32)
        out_f32 = acc
        h = acc.astype(jnp.bfloat16)                  # bf16 input for next layer
    o_ref[...] = out_f32                              # last layer kept in f32


# --------------------------------------------------------------------------
# Parameter handling (padding / packing done ONCE, not per forward call)
# --------------------------------------------------------------------------
def init_params(key):
    """Synthetic parameters matching Player's layer shapes.

    Weights are stored as (in_dim, out_dim) so the kernel computes x @ W + b,
    matching PyTorch's x @ W_torch.T + b.
    """
    ks = jax.random.split(key, 8)

    def lin(kw, kb, fan_in, fan_out):
        bound = 1.0 / jnp.sqrt(fan_in)
        w = jax.random.uniform(kw, (fan_in, fan_out), jnp.float32, -bound, bound)
        b = jax.random.uniform(kb, (fan_out,), jnp.float32, -bound, bound)
        return w, b

    w1, b1 = lin(ks[0], ks[1], IN_DIM, HIDDEN)
    w2, b2 = lin(ks[2], ks[3], HIDDEN, HIDDEN)
    w3, b3 = lin(ks[4], ks[5], HIDDEN, HIDDEN)
    w4, b4 = lin(ks[6], ks[7], HIDDEN, OUT_DIM)
    return (w1, b1, w2, b2, w3, b3, w4, b4)


def pack_params(params):
    """Zero-pad to (128,128)/(1,128), stack, and cast weights to bf16. Do once."""
    w1, b1, w2, b2, w3, b3, w4, b4 = params
    w_stack = jnp.stack(
        [_pad2d(w, LANE_PAD, LANE_PAD) for w in (w1, w2, w3, w4)]
    ).astype(jnp.bfloat16)                                        # (4,128,128) bf16
    b_stack = jnp.stack(
        [_pad2d(b.reshape(1, -1), 1, LANE_PAD) for b in (b1, b2, b3, b4)]
    ).astype(jnp.float32)                                         # (4,1,128) f32
    return w_stack, b_stack


# --------------------------------------------------------------------------
# Forward wrappers
# --------------------------------------------------------------------------
def player_forward_batched(xs, packed_params):
    """xs: (B, 6, 7) or (B, 42). Returns (B, 7) f32."""
    w_stack, b_stack = packed_params
    B = xs.shape[0]
    xs = jnp.asarray(xs, jnp.float32).reshape(B, -1)              # (B, 42)

    tb = MAX_TILE_ROWS if B >= MAX_TILE_ROWS else _round_up(B, ROW_ALIGN)
    bp = _round_up(B, tb)
    x_pad = jnp.pad(xs.astype(jnp.bfloat16),
                    ((0, bp - B), (0, LANE_PAD - IN_DIM)))        # (bp, 128) bf16

    flops = 2 * bp * LANE_PAD * LANE_PAD * NUM_LAYERS
    bytes_accessed = (x_pad.size * 2            # bf16 input
                      + w_stack.size * 2        # bf16 weights
                      + b_stack.size * 4        # f32 biases
                      + bp * LANE_PAD * 4)      # f32 output

    out = pl.pallas_call(
        mlp_kernel,
        out_shape=jax.ShapeDtypeStruct((bp, LANE_PAD), jnp.float32),
        grid=(bp // tb,),
        in_specs=[
            # streamed batch tile
            pl.BlockSpec((tb, LANE_PAD), lambda i: (i, 0)),
            # weights / biases: same block every step -> stay resident in VMEM
            pl.BlockSpec((NUM_LAYERS, LANE_PAD, LANE_PAD), lambda i: (0, 0, 0)),
            pl.BlockSpec((NUM_LAYERS, 1, LANE_PAD), lambda i: (0, 0, 0)),
        ],
        out_specs=pl.BlockSpec((tb, LANE_PAD), lambda i: (i, 0)),
        compiler_params=pltpu.CompilerParams(
            dimension_semantics=("parallel",)),
        cost_estimate=pl.CostEstimate(
            flops=flops, transcendentals=0, bytes_accessed=bytes_accessed),
    )(x_pad, w_stack, b_stack)

    return out[:B, :OUT_DIM]


def player_forward(x, packed_params):
    """Module-equivalent forward: any 42-element x -> (1, 7) f32."""
    x_flat = jnp.asarray(x, jnp.float32).reshape(1, -1)
    return player_forward_batched(x_flat, packed_params)


def reference_forward(x, params):
    """Pure f32 reference (handles single board or a batch)."""
    w1, b1, w2, b2, w3, b3, w4, b4 = params
    h = jnp.asarray(x, jnp.float32).reshape(-1, IN_DIM)
    for w, b in ((w1, b1), (w2, b2), (w3, b3), (w4, b4)):
        h = jax.nn.leaky_relu(h @ w + b, NEG_SLOPE)
    return h


if __name__ == "__main__":
    key = jax.random.PRNGKey(0)
    k_params, k_x1, k_xb = jax.random.split(key, 3)

    params = init_params(k_params)
    packed = pack_params(params)          # pad/stack/cast ONCE

    # Single Connect-4 style board: shape (6, 7), values in {-1, 0, 1}
    board = jax.random.randint(k_x1, (6, 7), -1, 2).astype(jnp.float32)
    out1 = jax.block_until_ready(player_forward(board, packed))
    ref1 = reference_forward(board, params)
    assert out1.shape == (1, OUT_DIM), out1.shape
    # bf16 weights/activations with f32 accumulation -> relaxed tolerance
    assert jnp.allclose(out1, ref1, atol=5e-2, rtol=5e-2), (out1, ref1)

    # Small batched call exercising the gridded path (weights stay resident)
    boards = jax.random.randint(k_xb, (32, 6, 7), -1, 2).astype(jnp.float32)
    outb = jax.block_until_ready(player_forward_batched(boards, packed))
    refb = reference_forward(boards, params)
    assert outb.shape == (32, OUT_DIM), outb.shape
    assert jnp.allclose(outb, refb, atol=5e-2, rtol=5e-2)

    print("KERNEL_OK")
</pallas_src>

<mosaic_0001>
module attributes {stable_mosaic.version = 11 : i64} {
  func.func @mlp_kernel(%arg0: i32, %arg1: memref<8x128xbf16, #tpu.memory_space<vmem>>, %arg2: memref<4x128x128xbf16, #tpu.memory_space<vmem>>, %arg3: memref<4x1x128xf32, #tpu.memory_space<vmem>>, %arg4: memref<8x128xf32, #tpu.memory_space<vmem>>) attributes {dimension_semantics = [#tpu.dimension_semantics<parallel>], iteration_bounds = array<i64: 1>, scalar_prefetch = 0 : i64, scratch_operands = 0 : i64, tpu.core_type = #tpu.core_type<tc>, window_params = [{transform_indices = @transform_0, window_bounds = array<i64: 8, 128>}, {pipeline_mode = #tpu.pipeline_mode<synchronous>, transform_indices = @transform_1, window_bounds = array<i64: 4, 128, 128>}, {pipeline_mode = #tpu.pipeline_mode<synchronous>, transform_indices = @transform_2, window_bounds = array<i64: 4, 1, 128>}, {transform_indices = @transform_3, window_bounds = array<i64: 8, 128>}]} {
    %c0 = arith.constant 0 : index
    %c0_0 = arith.constant 0 : index
    %0 = vector.load %arg1[%c0, %c0_0] : memref<8x128xbf16, #tpu.memory_space<vmem>>, vector<8x128xbf16>
    %c0_1 = arith.constant 0 : index
    %c0_2 = arith.constant 0 : index
    %c0_3 = arith.constant 0 : index
    %1 = vector.load %arg2[%c0_1, %c0_2, %c0_3] : memref<4x128x128xbf16, #tpu.memory_space<vmem>>, vector<1x128x128xbf16>
    %2 = vector.shape_cast %1 : vector<1x128x128xbf16> to vector<128x128xbf16>
    %cst = arith.constant dense<0.000000e+00> : vector<8x128xf32>
    %3 = tpu.matmul %0, %2, %cst {dimension_numbers = #tpu.dot_dimension_numbers<[1], [0], [0], [1], [0, 0, 1, 1], [], []>} : vector<8x128xbf16>, vector<128x128xbf16>, vector<8x128xf32> -> vector<8x128xf32>
    %c0_4 = arith.constant 0 : index
    %c0_5 = arith.constant 0 : index
    %c0_6 = arith.constant 0 : index
    %4 = vector.load %arg3[%c0_4, %c0_5, %c0_6] : memref<4x1x128xf32, #tpu.memory_space<vmem>>, vector<1x1x128xf32>
    %5 = vector.shape_cast %4 : vector<1x1x128xf32> to vector<1x128xf32>
    %6 = vector.broadcast %5 : vector<1x128xf32> to vector<8x128xf32>
    %7 = arith.addf %3, %6 : vector<8x128xf32>
    %cst_7 = arith.constant 0.000000e+00 : f32
    %8 = vector.broadcast %cst_7 : f32 to vector<8x128xf32>
    %9 = arith.cmpf ogt, %7, %8 : vector<8x128xf32>
    %cst_8 = arith.constant 0.00999999977 : f32
    %10 = vector.broadcast %cst_8 : f32 to vector<8x128xf32>
    %11 = arith.mulf %10, %7 : vector<8x128xf32>
    %12 = arith.select %9, %7, %11 : vector<8x128xi1>, vector<8x128xf32>
    %13 = arith.truncf %12 : vector<8x128xf32> to vector<8x128xbf16>
    %c1 = arith.constant 1 : index
    %c0_9 = arith.constant 0 : index
    %c0_10 = arith.constant 0 : index
    %14 = vector.load %arg2[%c1, %c0_9, %c0_10] : memref<4x128x128xbf16, #tpu.memory_space<vmem>>, vector<1x128x128xbf16>
    %15 = vector.shape_cast %14 : vector<1x128x128xbf16> to vector<128x128xbf16>
    %cst_11 = arith.constant dense<0.000000e+00> : vector<8x128xf32>
    %16 = tpu.matmul %13, %15, %cst_11 {dimension_numbers = #tpu.dot_dimension_numbers<[1], [0], [0], [1], [0, 0, 1, 1], [], []>} : vector<8x128xbf16>, vector<128x128xbf16>, vector<8x128xf32> -> vector<8x128xf32>
    %c1_12 = arith.constant 1 : index
    %c0_13 = arith.constant 0 : index
    %c0_14 = arith.constant 0 : index
    %17 = vector.load %arg3[%c1_12, %c0_13, %c0_14] : memref<4x1x128xf32, #tpu.memory_space<vmem>>, vector<1x1x128xf32>
    %18 = vector.shape_cast %17 : vector<1x1x128xf32> to vector<1x128xf32>
    %19 = vector.broadcast %18 : vector<1x128xf32> to vector<8x128xf32>
    %20 = arith.addf %16, %19 : vector<8x128xf32>
    %cst_15 = arith.constant 0.000000e+00 : f32
    %21 = vector.broadcast %cst_15 : f32 to vector<8x128xf32>
    %22 = arith.cmpf ogt, %20, %21 : vector<8x128xf32>
    %cst_16 = arith.constant 0.00999999977 : f32
    %23 = vector.broadcast %cst_16 : f32 to vector<8x128xf32>
    %24 = arith.mulf %23, %20 : vector<8x128xf32>
    %25 = arith.select %22, %20, %24 : vector<8x128xi1>, vector<8x128xf32>
    %26 = arith.truncf %25 : vector<8x128xf32> to vector<8x128xbf16>
    %c2 = arith.constant 2 : index
    %c0_17 = arith.constant 0 : index
    %c0_18 = arith.constant 0 : index
    %27 = vector.load %arg2[%c2, %c0_17, %c0_18] : memref<4x128x128xbf16, #tpu.memory_space<vmem>>, vector<1x128x128xbf16>
    %28 = vector.shape_cast %27 : vector<1x128x128xbf16> to vector<128x128xbf16>
    %cst_19 = arith.constant dense<0.000000e+00> : vector<8x128xf32>
    %29 = tpu.matmul %26, %28, %cst_19 {dimension_numbers = #tpu.dot_dimension_numbers<[1], [0], [0], [1], [0, 0, 1, 1], [], []>} : vector<8x128xbf16>, vector<128x128xbf16>, vector<8x128xf32> -> vector<8x128xf32>
    %c2_20 = arith.constant 2 : index
    %c0_21 = arith.constant 0 : index
    %c0_22 = arith.constant 0 : index
    %30 = vector.load %arg3[%c2_20, %c0_21, %c0_22] : memref<4x1x128xf32, #tpu.memory_space<vmem>>, vector<1x1x128xf32>
    %31 = vector.shape_cast %30 : vector<1x1x128xf32> to vector<1x128xf32>
    %32 = vector.broadcast %31 : vector<1x128xf32> to vector<8x128xf32>
    %33 = arith.addf %29, %32 : vector<8x128xf32>
    %cst_23 = arith.constant 0.000000e+00 : f32
    %34 = vector.broadcast %cst_23 : f32 to vector<8x128xf32>
    %35 = arith.cmpf ogt, %33, %34 : vector<8x128xf32>
    %cst_24 = arith.constant 0.00999999977 : f32
    %36 = vector.broadcast %cst_24 : f32 to vector<8x128xf32>
    %37 = arith.mulf %36, %33 : vector<8x128xf32>
    %38 = arith.select %35, %33, %37 : vector<8x128xi1>, vector<8x128xf32>
    %39 = arith.truncf %38 : vector<8x128xf32> to vector<8x128xbf16>
    %c3 = arith.constant 3 : index
    %c0_25 = arith.constant 0 : index
    %c0_26 = arith.constant 0 : index
    %40 = vector.load %arg2[%c3, %c0_25, %c0_26] : memref<4x128x128xbf16, #tpu.memory_space<vmem>>, vector<1x128x128xbf16>
    %41 = vector.shape_cast %40 : vector<1x128x128xbf16> to vector<128x128xbf16>
    %cst_27 = arith.constant dense<0.000000e+00> : vector<8x128xf32>
    %42 = tpu.matmul %39, %41, %cst_27 {dimension_numbers = #tpu.dot_dimension_numbers<[1], [0], [0], [1], [0, 0, 1, 1], [], []>} : vector<8x128xbf16>, vector<128x128xbf16>, vector<8x128xf32> -> vector<8x128xf32>
    %c3_28 = arith.constant 3 : index
    %c0_29 = arith.constant 0 : index
    %c0_30 = arith.constant 0 : index
    %43 = vector.load %arg3[%c3_28, %c0_29, %c0_30] : memref<4x1x128xf32, #tpu.memory_space<vmem>>, vector<1x1x128xf32>
    %44 = vector.shape_cast %43 : vector<1x1x128xf32> to vector<1x128xf32>
    %45 = vector.broadcast %44 : vector<1x128xf32> to vector<8x128xf32>
    %46 = arith.addf %42, %45 : vector<8x128xf32>
    %cst_31 = arith.constant 0.000000e+00 : f32
    %47 = vector.broadcast %cst_31 : f32 to vector<8x128xf32>
    %48 = arith.cmpf ogt, %46, %47 : vector<8x128xf32>
    %cst_32 = arith.constant 0.00999999977 : f32
    %49 = vector.broadcast %cst_32 : f32 to vector<8x128xf32>
    %50 = arith.mulf %49, %46 : vector<8x128xf32>
    %51 = arith.select %48, %46, %50 : vector<8x128xi1>, vector<8x128xf32>
    %c0_33 = arith.constant 0 : index
    %c0_34 = arith.constant 0 : index
    %52 = vector.load %arg4[%c0_33, %c0_34] : memref<8x128xf32, #tpu.memory_space<vmem>>, vector<8x128xf32>
    tpu.vector_store %arg4[%c0_33, %c0_34], %51 {strides = array<i32>} : memref<8x128xf32, #tpu.memory_space<vmem>>, vector<8x128xf32>,
    return
  }
  func.func @transform_0(%arg0: i32) -> (i32, i32) {
    %c0_i32 = arith.constant 0 : i32
    %c0_i32_0 = arith.constant 0 : i32
    return %arg0, %c0_i32 : i32, i32
  }
  func.func @transform_1(%arg0: i32) -> (i32, i32, i32) {
    %c0_i32 = arith.constant 0 : i32
    %c0_i32_0 = arith.constant 0 : i32
    %c0_i32_1 = arith.constant 0 : i32
    %c0_i32_2 = arith.constant 0 : i32
    return %c0_i32, %c0_i32_0, %c0_i32_1 : i32, i32, i32
  }
  func.func @transform_2(%arg0: i32) -> (i32, i32, i32) {
    %c0_i32 = arith.constant 0 : i32
    %c0_i32_0 = arith.constant 0 : i32
    %c0_i32_1 = arith.constant 0 : i32
    %c0_i32_2 = arith.constant 0 : i32
    return %c0_i32, %c0_i32_0, %c0_i32_1 : i32, i32, i32
  }
  func.func @transform_3(%arg0: i32) -> (i32, i32) {
    %c0_i32 = arith.constant 0 : i32
    %c0_i32_0 = arith.constant 0 : i32
    return %arg0, %c0_i32 : i32, i32
  }
}

</mosaic_0001>

<bundles_post_ra>
// kernel: tpu_custom_call.1
= control target key start
LH: loop header
LB: loop body
LE: loop exit
PB: predicated region body
PF: predicated region fallthrough
CT: control target
= control target key end

     0   :  { %8 = vsyncpa [#allocation3], 0  ;;  %s913_s0 = inlined_call_operand.hbm [shape: bf16[8,128], index: 0, kind: input, shape index: {}]   ;;  %s914_s1 = inlined_call_operand.hbm [shape: bf16[4,128,128], index: 1, kind: input, shape index: {}]   ;;  %s915_s2 = inlined_call_operand.vmem [shape: f32[4,1,128], index: 2, kind: input, shape index: {}]   ;;  %s916_s3 = inlined_call_operand.hbm [shape: f32[8,128], index: 3, kind: output, shape index: {}]  }
   0x1   :  { %9 = vsyncpa [#allocation6], 0 }
   0x2   :  { %10 = vsyncpa [#allocation4], 0  ;;  %s791_s12 = smov [#allocation2]   ;;  %s792_s14 = smov [#allocation5]  }
   0x3   :  { %s17_s13 = sshll.u32 %s791_s12, 4  ;;  %s26_s15 = sshll.u32 %s792_s14, 4  ;;  %s18_s13 = int_to_ptr.vmem [resolvable:$true] %s17_s13  ;;  %s818_s15 = int_to_ptr.vmem [resolvable:$true] %s26_s15 }
   0x4   :  { %s719_s18 = scalar_lea.hbm %s913_s0, 64 }
   0x5   :  { %p720_p0 = scmp.ne.s32.totalorder %s913_s0, %s719_s18  ;;  %p723_p1 = scmp.lt.u32.totalorder %s719_s18, %s913_s0 }
   0x7   :  { %p725_p2 = pnand %p723_p1, %p720_p0 }
   0x9   :  { %728 = shalt.err (!%p725_p2)
}
   0xa   :  { %s729_s23 = scalar_lea.vmem %s18_s13, 64  ;;  %p734_p4 = scmp.lt.s32.totalorder %s18_s13, %s18_s13 }
   0xb   :  { %p730_p3 = scmp.ne.s32.totalorder %s18_s13, %s729_s23  ;;  %p735_p5 = scmp.lt.s32.totalorder %s729_s23, %s729_s23 }
   0xd   :  { %p736_p6 = por %p735_p5, %p734_p4 }
   0xf   :  { %p737_p7 = pnand %p736_p6, %p730_p3 }
  0x11   :  { %740 = shalt.err (!%p737_p7)
}
  0x12   :  { %20 = dma.hbm_to_vmem [thread:$0]  %s913_s0, 64, %s18_s13, [#allocation3]  }
  0x13   :  { %s741_s28 = scalar_lea.hbm %s914_s1, 4096 }
  0x14   :  { %p742_p8 = scmp.ne.s32.totalorder %s914_s1, %s741_s28  ;;  %p745_p9 = scmp.lt.u32.totalorder %s741_s28, %s914_s1 }
  0x16   :  { %p747_p10 = pnand %p745_p9, %p742_p8 }
  0x18   :  { %750 = shalt.err (!%p747_p10)
}
  0x19   :  { %s751_s6 = scalar_lea.vmem %s818_s15, 4096  ;;  %p756_p12 = scmp.lt.s32.totalorder %s818_s15, %s818_s15 }
  0x1a   :  { %p752_p11 = scmp.ne.s32.totalorder %s818_s15, %s751_s6  ;;  %p757_p13 = scmp.lt.s32.totalorder %s751_s6, %s751_s6 }
  0x1c   :  { %p758_p0 = por %p757_p13, %p756_p12 }
  0x1e   :  { %p759_p1 = pnand %p758_p0, %p752_p11 }
  0x20   :  { %762 = shalt.err (!%p759_p1)
}
  0x21   :  { %s793_s0 = smov 64   ;;  %s794_s7 = smov 4  }
  0x22   :  { %32 = dma.hbm_to_vmem [thread:$0]  %s914_s1, 4096, %s818_s15, [#allocation6], %s793_s0, %s793_s0, %s794_s7  }
  0x23   :  { %785 = dma.done.wait [#allocation3], 64  }
  0x24   :  { %786 = vsyncadd [#allocation3], 4294967232 }
  0x25   :  { %787 = dma.done.wait [#allocation6], 4096  }
  0x26   :  { %788 = vsyncadd [#allocation6], 4294963200  ;;  %v795_v0 = vmov 0.0   ;;  %vm796_vm0 = vmmov 0   ;;  %v687_v1 = vld [vmem:[#allocation5] sm:$0xff]   ;;  %v688_v2 = vld [vmem:[#allocation5 + $0x8] sm:$0xff]  }
  0x27   :  { %600 = vmatprep.subr.bf16.mxu0 %v795_v0  ;;  %616 = vmatprep.mubr.msk.bf16.mxu0 %vm796_vm0, %v795_v0  ;;  %v689_v3 = vld [vmem:[#allocation5 + $0x10] sm:$0xff]   ;;  %v695_v4 = vld [vmem:[#allocation5 + $0x40] sm:$0xff]   ;;  %v690_v5 = vld [vmem:[#allocation5 + $0x18] sm:$0xff]   ;;  %s797_s17 = smov [#allocation7]  }
  0x28   :  { %620 = vmatprep.subr.bf16.mxu1 %v795_v0  ;;  %636 = vmatprep.mubr.msk.bf16.mxu1 %vm796_vm0, %v795_v0  ;;  %v696_v6 = vld [vmem:[#allocation5 + $0x48] sm:$0xff]   ;;  %v691_v7 = vld [vmem:[#allocation5 + $0x20] sm:$0xff]   ;;  %v697_v8 = vld [vmem:[#allocation5 + $0x50] sm:$0xff]   ;;  %s515_s18 = sshll.u32 %s797_s17, 4  ;;  %s516_s18 = int_to_ptr.vmem [resolvable:$true] %s515_s18 }
  0x29   :  { %601 = vmatpush3.bf16.msra.mxu0 %v687_v1  ;;  %621 = vmatpush3.bf16.msra.mxu1 %v695_v4  ;;  %v692_v9 = vld [vmem:[#allocation5 + $0x28] sm:$0xff]   ;;  %v698_v10 = vld [vmem:[#allocation5 + $0x58] sm:$0xff]   ;;  %v693_v11 = vld [vmem:[#allocation5 + $0x30] sm:$0xff]   ;;  %s763_s19 = scalar_lea.vmem %s516_s18, 128  ;;  %p768_p3 = scmp.lt.s32.totalorder %s516_s18, %s516_s18 }
  0x2a   :  { %602 = vmatprep.subr.bf16.mxu0 %v795_v0  ;;  %622 = vmatprep.subr.bf16.mxu1 %v795_v0  ;;  %v699_v12 = vld [vmem:[#allocation5 + $0x60] sm:$0xff]   ;;  %v694_v13 = vld [vmem:[#allocation5 + $0x38] sm:$0xff]   ;;  %v700_v14 = vld [vmem:[#allocation5 + $0x68] sm:$0xff]   ;;  %p764_p2 = scmp.ne.s32.totalorder %s516_s18, %s763_s19  ;;  %p769_p4 = scmp.lt.s32.totalorder %s763_s19, %s763_s19 }
  0x2b   :  { %v42_v15 = vld [vmem:[#allocation2] sm:$0xf]  ;;  %v701_v16 = vld [vmem:[#allocation5 + $0x70] sm:$0xff]   ;;  %v703_v18 = vld [vmem:[#allocation5 + $0x80] sm:$0xff]  }
  0x2c   :  { %v702_v17 = vld [vmem:[#allocation5 + $0x78] sm:$0xff]   ;;  %v704_v19 = vld [vmem:[#allocation5 + $0x88] sm:$0xff]   ;;  %v705_v20 = vld [vmem:[#allocation5 + $0x90] sm:$0xff]   ;;  %p770_p5 = por %p769_p4, %p768_p3 }
  0x2d   :  { %603 = vmatpush3.bf16.msra.mxu0 %v688_v2  ;;  %623 = vmatpush3.bf16.msra.mxu1 %v696_v6  ;;  %v706_v21 = vld [vmem:[#allocation5 + $0x98] sm:$0xff]   ;;  %v707_v22 = vld [vmem:[#allocation5 + $0xa0] sm:$0xff]   ;;  %v708_v23 = vld [vmem:[#allocation5 + $0xa8] sm:$0xff]  }
  0x2e   :  { %604 = vmatprep.subr.bf16.mxu0 %v795_v0  ;;  %624 = vmatprep.subr.bf16.mxu1 %v795_v0  ;;  %v525_v24 = vld [vmem:[%s915_s2] ss:$0 sm:$0xff]  ;;  %v709_v33 = vld [vmem:[#allocation5 + $0xb0] sm:$0xff]   ;;  %v711_v35 = vld [vmem:[#allocation5 + $0xc0] sm:$0xff]   ;;  %p771_p6 = pnand %p770_p5, %p764_p2 }
  0x2f   :  { %v710_v34 = vld [vmem:[#allocation5 + $0xb8] sm:$0xff]   ;;  %v712_v36 = vld [vmem:[#allocation5 + $0xc8] sm:$0xff]   ;;  %v713_v37 = vld [vmem:[#allocation5 + $0xd0] sm:$0xff]  }
  0x30   :  { %v714_v38 = vld [vmem:[#allocation5 + $0xd8] sm:$0xff]   ;;  %v715_v39 = vld [vmem:[#allocation5 + $0xe0] sm:$0xff]   ;;  %v716_v40 = vld [vmem:[#allocation5 + $0xe8] sm:$0xff]  }
  0x31   :  { %605 = vmatpush3.bf16.msra.mxu0 %v689_v3  ;;  %625 = vmatpush3.bf16.msra.mxu1 %v697_v8  ;;  %v535_v41 = vld [vmem:[%s915_s2 + $0x1] ss:$0 sm:$0xff]  ;;  %v717_v50 = vld [vmem:[#allocation5 + $0xf0] sm:$0xff]   ;;  %v545_v52 = vld [vmem:[%s915_s2 + $0x2] ss:$0 sm:$0xff] }
  0x32   :  { %606 = vmatprep.subr.bf16.mxu0 %v795_v0  ;;  %626 = vmatprep.subr.bf16.mxu1 %v795_v0  ;;  %v718_v51 = vld [vmem:[#allocation5 + $0xf8] sm:$0xff]  }
  0x33   :  { %v555_v61 = vld [vmem:[%s915_s2 + $0x3] ss:$0 sm:$0xff] }
  0x35   :  { %607 = vmatpush3.bf16.msra.mxu0 %v690_v5  ;;  %627 = vmatpush3.bf16.msra.mxu1 %v698_v10 }
  0x36   :  { %608 = vmatprep.subr.bf16.mxu0 %v795_v0  ;;  %628 = vmatprep.subr.bf16.mxu1 %v795_v0 }
  0x39   :  { %609 = vmatpush3.bf16.msra.mxu0 %v691_v7  ;;  %629 = vmatpush3.bf16.msra.mxu1 %v699_v12 }
  0x3a   :  { %610 = vmatprep.subr.bf16.mxu0 %v795_v0  ;;  %630 = vmatprep.subr.bf16.mxu1 %v795_v0 }
  0x3d   :  { %611 = vmatpush3.bf16.msra.mxu0 %v692_v9  ;;  %631 = vmatpush3.bf16.msra.mxu1 %v700_v14 }
  0x3e   :  { %612 = vmatprep.subr.bf16.mxu0 %v795_v0  ;;  %632 = vmatprep.subr.bf16.mxu1 %v795_v0 }
  0x41   :  { %613 = vmatpush3.bf16.msra.mxu0 %v693_v11  ;;  %633 = vmatpush3.bf16.msra.mxu1 %v701_v16 }
  0x42   :  { %614 = vmatprep.subr.bf16.mxu0 %v795_v0  ;;  %634 = vmatprep.subr.bf16.mxu1 %v795_v0 }
  0x45   :  { %615 = vmatpush3.bf16.msra.mxu0 %v694_v13  ;;  %635 = vmatpush3.bf16.msra.mxu1 %v702_v17 }
  0x46   :  { %640 = vmatprep.subr.bf16.mxu0 %v795_v0  ;;  %660 = vmatprep.subr.bf16.mxu1 %v795_v0 }
  0x48   :  { %617 = vmatmul.mubr.bf16.vlgmr.msra.gmra.mrb[0].mxu0 %v42_v15 }
  0x49   :  { %656 = vmatprep.mubr.msk.bf16.mxu0 %vm796_vm0, %v795_v0  ;;  %641 = vmatpush3.bf16.msra.mxu0 %v703_v18 }
  0x4a   :  { %642 = vmatprep.subr.bf16.mxu0 %v795_v0 }
  0x4d   :  { %643 = vmatpush3.bf16.msra.mxu0 %v704_v19 }
  0x4e   :  { %644 = vmatprep.subr.bf16.mxu0 %v795_v0 }
  0x51   :  { %645 = vmatpush3.bf16.msra.mxu0 %v705_v20 }
  0x52   :  { %646 = vmatprep.subr.bf16.mxu0 %v795_v0 }
  0x55   :  { %647 = vmatpush3.bf16.msra.mxu0 %v706_v21 }
  0x56   :  { %648 = vmatprep.subr.bf16.mxu0 %v795_v0 }
  0x59   :  { %649 = vmatpush3.bf16.msra.mxu0 %v707_v22 }
  0x5a   :  { %650 = vmatprep.subr.bf16.mxu0 %v795_v0 }
  0x5d   :  { %651 = vmatpush3.bf16.msra.mxu0 %v708_v23 }
  0x5e   :  { %652 = vmatprep.subr.bf16.mxu0 %v795_v0 }
  0x61   :  { %653 = vmatpush3.bf16.msra.mxu0 %v709_v33 }
  0x62   :  { %654 = vmatprep.subr.bf16.mxu0 %v795_v0 }
  0x65   :  { %655 = vmatpush3.bf16.msra.mxu0 %v710_v34 }
 0x11b   :  { %v148_v25 = vpop.f32.mrb[0].mxu0 }
 0x11c   :  { %v149_v26 = vadd.f32 %v525_v24, %v148_v25  ;;  %v618_v27 = vpop.f32.mrb[1].mxu0 }
 0x11d   :  { %v151_v28 = vpop.f32.mrb[2].mxu0 }
 0x11e   :  { %vm154_vm1 = vcmp.gt.f32.partialorder %v149_v26, 0.0  ;;  %v155_v29 = vmul.f32 0.01, %v149_v26  ;;  %v619_v30 = vpop.f32.mrb[3].mxu0 }
 0x120   :  { %v156_v31 = vsel %vm154_vm1, %v149_v26, %v155_v29 }
 0x121   :  { %v157_v32 = vpack.c.bf16 %v156_v31, %v156_v31 }
 0x123   :  { %637 = vmatmul.mubr.bf16.vlgmr.msra.gmra.mrb[0].mxu1 %v157_v32 }
 0x124   :  { %676 = vmatprep.mubr.msk.bf16.mxu1 %vm796_vm0, %v795_v0  ;;  %661 = vmatpush3.bf16.msra.mxu1 %v711_v35 }
 0x125   :  { %662 = vmatprep.subr.bf16.mxu1 %v795_v0 }
 0x128   :  { %663 = vmatpush3.bf16.msra.mxu1 %v712_v36 }
 0x129   :  { %664 = vmatprep.subr.bf16.mxu1 %v795_v0 }
 0x12c   :  { %665 = vmatpush3.bf16.msra.mxu1 %v713_v37 }
 0x12d   :  { %666 = vmatprep.subr.bf16.mxu1 %v795_v0 }
 0x130   :  { %667 = vmatpush3.bf16.msra.mxu1 %v714_v38 }
 0x131   :  { %668 = vmatprep.subr.bf16.mxu1 %v795_v0 }
 0x134   :  { %669 = vmatpush3.bf16.msra.mxu1 %v715_v39 }
 0x135   :  { %670 = vmatprep.subr.bf16.mxu1 %v795_v0 }
 0x138   :  { %671 = vmatpush3.bf16.msra.mxu1 %v716_v40 }
 0x139   :  { %672 = vmatprep.subr.bf16.mxu1 %v795_v0 }
 0x13c   :  { %673 = vmatpush3.bf16.msra.mxu1 %v717_v50 }
 0x13d   :  { %674 = vmatprep.subr.bf16.mxu1 %v795_v0 }
 0x140   :  { %675 = vmatpush3.bf16.msra.mxu1 %v718_v51 }
 0x1f6   :  { %v265_v42 = vpop.f32.mrb[0].mxu1 }
 0x1f7   :  { %v266_v43 = vadd.f32 %v535_v41, %v265_v42  ;;  %v638_v44 = vpop.f32.mrb[1].mxu1 }
 0x1f8   :  { %v268_v45 = vpop.f32.mrb[2].mxu1 }
 0x1f9   :  { %vm271_vm2 = vcmp.gt.f32.partialorder %v266_v43, 0.0  ;;  %v272_v46 = vmul.f32 0.01, %v266_v43  ;;  %v639_v47 = vpop.f32.mrb[3].mxu1 }
 0x1fb   :  { %v273_v48 = vsel %vm271_vm2, %v266_v43, %v272_v46 }
 0x1fc   :  { %v274_v49 = vpack.c.bf16 %v273_v48, %v273_v48 }
 0x1fe   :  { %657 = vmatmul.mubr.bf16.vlgmr.msra.gmra.mrb[4].mxu0 %v274_v49 }
 0x2d1   :  { %v382_v53 = vpop.f32.mrb[4].mxu0 }
 0x2d2   :  { %v383_v54 = vadd.f32 %v545_v52, %v382_v53  ;;  %v658_v55 = vpop.f32.mrb[5].mxu0 }
 0x2d3   :  { %v385_v56 = vpop.f32.mrb[6].mxu0 }
 0x2d4   :  { %vm388_vm3 = vcmp.gt.f32.partialorder %v383_v54, 0.0  ;;  %v389_v57 = vmul.f32 0.01, %v383_v54  ;;  %v659_v58 = vpop.f32.mrb[7].mxu0 }
 0x2d6   :  { %v390_v59 = vsel %vm388_vm3, %v383_v54, %v389_v57 }
 0x2d7   :  { %v391_v60 = vpack.c.bf16 %v390_v59, %v390_v59 }
 0x2d9   :  { %677 = vmatmul.mubr.bf16.vlgmr.msra.gmra.mrb[4].mxu1 %v391_v60 }
 0x3ac   :  { %v499_v62 = vpop.f32.mrb[4].mxu1 }
 0x3ad   :  { %v500_v63 = vadd.f32 %v555_v61, %v499_v62  ;;  %v678_v0 = vpop.f32.mrb[5].mxu1 }
 0x3ae   :  { %v502_v1 = vpop.f32.mrb[6].mxu1 }
 0x3af   :  { %v506_v2 = vmul.f32 0.01, %v500_v63  ;;  %v679_v3 = vpop.f32.mrb[7].mxu1  ;;  %vm505_vm4 = vcmp.gt.f32.partialorder %v500_v63, 0.0 }
 0x3b1   :  { %v507_v4 = vsel %vm505_vm4, %v500_v63, %v506_v2 }
 0x3b2   :  { %508 = vst [vmem:[#allocation7] sm:$0xff] %v507_v4 }
 0x3b3   :  { %774 = shalt.err (!%p771_p6)
}
 0x3b4   :  { %s775_s21 = scalar_lea.hbm %s916_s3, 128 }
 0x3b5   :  { %p776_p7 = scmp.ne.s32.totalorder %s916_s3, %s775_s21  ;;  %p779_p8 = scmp.lt.u32.totalorder %s775_s21, %s916_s3 }
 0x3b7   :  { %p781_p9 = pnand %p779_p8, %p776_p7 }
 0x3b9   :  { %784 = shalt.err (!%p781_p9)
}
 0x3ba   :  { %518 = dma.vmem_to_hbm [thread:$0]  %s516_s18, 128, %s916_s3, [#allocation4]  }
 0x3bb   :  { %789 = dma.done.wait [#allocation4], 128  }
 0x3bc   :  { %790 = vsyncadd [#allocation4], 4294967168 }
 0x3bd   :  { %522 = vsyncpa [#allocation3], 1 }
 0x3be   :  { %523 = vsyncpa [#allocation6], 1 }
 0x3bf   :  { %524 = vsyncpa [#allocation4], 1 }

</bundles_post_ra>
